<compile_context>
chip_gen: v5e
topology: v5e:2x2
jax: 0.10.0
libtpu: 0.0.40
codegen_flags: <defaults>
</compile_context>

<pallas_src>
import functools

import jax
import jax.numpy as jnp
from jax import lax
from jax.experimental import pallas as pl
from jax.experimental.pallas import tpu as pltpu


def _round_up(n, m):
    return ((n + m - 1) // m) * m


def _vmem_budget_bytes():
    """~75% of physical VMEM (leave headroom for compiler scratch)."""
    try:
        cap = int(pltpu.get_tpu_info().vmem_capacity_bytes)
    except Exception:
        cap = 64 * 1024 * 1024  # v7x physical size; safe lower bound everywhere
    return (cap * 3) // 4


# ---------------------------------------------------------------------------
# Fused single-pass kernel: whole x[b] resident in VMEM, grid = (B,).
# ---------------------------------------------------------------------------
def _fused_kernel(x_ref, g_ref, o_ref):
    x = x_ref[...]                                       # (C, HW)
    g = g_ref[...]                                       # (Q, HW)
    # energy[q, c] = sum_s guide[q, s] * x[c, s]  (contract the lane axis of
    # both operands; no explicit x^T materialization).
    energy = lax.dot_general(
        g, x, dimension_numbers=(((1,), (1,)), ((), ())),
        preferred_element_type=jnp.float32)
    # softmax(rowmax(E) - E) over channels == exp(rowmin(E) - E) normalized.
    e_min = jnp.min(energy, axis=-1, keepdims=True)
    p = jnp.exp(e_min - energy)
    attn = p / jnp.sum(p, axis=-1, keepdims=True)        # exact divide (tiny)
    out = jnp.dot(attn.astype(x.dtype), x, preferred_element_type=jnp.float32)
    o_ref[...] = out.astype(o_ref.dtype)


# ---------------------------------------------------------------------------
# Streaming fallback, phase 1: energy accumulation over HW tiles + softmax.
# ---------------------------------------------------------------------------
def _energy_softmax_kernel(x_ref, g_ref, attn_ref, acc_ref, *, hw, thw):
    k = pl.program_id(1)

    @pl.when(k == 0)
    def _init():
        acc_ref[...] = jnp.zeros_like(acc_ref)

    g = g_ref[...]                                       # (Q, thw)
    if hw % thw != 0:
        # Ragged last HW tile: out-of-range lanes hold stale VMEM data.  Zero
        # the (cheap, Q-row) guide operand so they contribute nothing.
        lane = lax.broadcasted_iota(jnp.int32, g.shape, dimension=1)
        g = jnp.where(lane < hw - k * thw, g, jnp.zeros_like(g))

    acc_ref[...] += lax.dot_general(
        g, x_ref[...], dimension_numbers=(((1,), (1,)), ((), ())),
        preferred_element_type=jnp.float32)

    @pl.when(k == pl.num_programs(1) - 1)
    def _finalize():
        energy = acc_ref[...]
        e_min = jnp.min(energy, axis=-1, keepdims=True)
        p = jnp.exp(e_min - energy)
        attn_ref[...] = (p / jnp.sum(p, axis=-1, keepdims=True)).astype(
            attn_ref.dtype)


# ---------------------------------------------------------------------------
# Streaming fallback, phase 2: out tile = attn (Q, C) @ x tile (C, thw).
# ---------------------------------------------------------------------------
def _apply_attn_kernel(attn_ref, x_ref, o_ref):
    o_ref[...] = jnp.dot(
        attn_ref[...].astype(x_ref.dtype), x_ref[...],
        preferred_element_type=jnp.float32).astype(o_ref.dtype)


def guided_cam_module(x, guide, *, max_hw_tile=4096):
    """JAX/Pallas equivalent of guided_CAM_Module.forward(x, guide).

    x:     (B, C, H, W)   (C = in_dim, the "C*5" channels)
    guide: (B, Q, H, W)   (Q = query_dim)
    returns (B, Q, H, W)
    """
    B, C, H, W = x.shape
    Bq, Q, Hq, Wq = guide.shape
    assert (B, H, W) == (Bq, Hq, Wq)
    HW = H * W
    dtype = x.dtype
    itemsize = jnp.dtype(dtype).itemsize

    x_flat = x.reshape(B, C, HW)
    g_flat = guide.reshape(B, Q, HW)

    budget = _vmem_budget_bytes()

    # ---- Fused path: x[b] resident in VMEM (x read from HBM once, attn never
    #      round-trips HBM, single launch).  Gate on the VMEM budget. --------
    fused_bytes = (
        2 * (C + Q) * HW * itemsize          # double-buffered x + guide blocks
        + 2 * Q * HW * itemsize              # double-buffered output block
        + Q * HW * 4 + Q * C * 4             # f32 temporaries
        + (2 << 20)                          # slack
    )
    if fused_bytes <= budget:
        out_flat = pl.pallas_call(
            _fused_kernel,
            out_shape=jax.ShapeDtypeStruct((B, Q, HW), dtype),
            grid_spec=pltpu.PrefetchScalarGridSpec(
                num_scalar_prefetch=0,
                grid=(B,),
                in_specs=[
                    pl.BlockSpec((None, C, HW), lambda b: (b, 0, 0)),
                    pl.BlockSpec((None, Q, HW), lambda b: (b, 0, 0)),
                ],
                out_specs=pl.BlockSpec((None, Q, HW), lambda b: (b, 0, 0)),
            ),
            compiler_params=pltpu.CompilerParams(
                dimension_semantics=("parallel",),
                vmem_limit_bytes=budget,
            ),
        )(x_flat, g_flat)
        return out_flat.reshape(B, Q, H, W)

    # ---- Streaming fallback: two passes over large HW tiles (cdiv grid,
    #      in-kernel mask for the ragged last tile, no HBM-side padding). ----
    thw = min(max_hw_tile, _round_up(HW, 128))
    while thw > 128 and 4 * (C + 2 * Q) * thw * itemsize > budget:
        thw -= 128
    n_hw = pl.cdiv(HW, thw)

    # Phase 1: attn (B, Q, C) in float32 (tiny; keeping it f32 is free).
    attn = pl.pallas_call(
        functools.partial(_energy_softmax_kernel, hw=HW, thw=thw),
        out_shape=jax.ShapeDtypeStruct((B, Q, C), jnp.float32),
        grid_spec=pltpu.PrefetchScalarGridSpec(
            num_scalar_prefetch=0,
            grid=(B, n_hw),
            in_specs=[
                pl.BlockSpec((None, C, thw), lambda b, k: (b, 0, k)),
                pl.BlockSpec((None, Q, thw), lambda b, k: (b, 0, k)),
            ],
            out_specs=pl.BlockSpec((None, Q, C), lambda b, k: (b, 0, 0)),
            scratch_shapes=[pltpu.VMEM((Q, C), jnp.float32)],
        ),
        compiler_params=pltpu.CompilerParams(
            dimension_semantics=("parallel", "arbitrary"),
            vmem_limit_bytes=budget,
        ),
    )(x_flat, g_flat)

    # Phase 2: out tile = attn @ x tile, streamed lane-dense to HBM.
    out_flat = pl.pallas_call(
        _apply_attn_kernel,
        out_shape=jax.ShapeDtypeStruct((B, Q, HW), dtype),
        grid_spec=pltpu.PrefetchScalarGridSpec(
            num_scalar_prefetch=0,
            grid=(B, n_hw),
            in_specs=[
                pl.BlockSpec((None, Q, C), lambda b, k: (b, 0, 0)),
                pl.BlockSpec((None, C, thw), lambda b, k: (b, 0, k)),
            ],
            out_specs=pl.BlockSpec((None, Q, thw), lambda b, k: (b, 0, k)),
        ),
        compiler_params=pltpu.CompilerParams(
            dimension_semantics=("parallel", "parallel"),
            vmem_limit_bytes=budget,
        ),
    )(attn, x_flat)

    return out_flat.reshape(B, Q, H, W)


def _reference(x, guide):
    B, C, H, W = x.shape
    Q = guide.shape[1]
    xf = x.reshape(B, C, H * W).astype(jnp.float32)
    gf = guide.reshape(B, Q, H * W).astype(jnp.float32)
    energy = jnp.einsum("bqs,bcs->bqc", gf, xf,
                        precision=jax.lax.Precision.HIGHEST)
    energy_new = jnp.max(energy, axis=-1, keepdims=True) - energy
    attn = jax.nn.softmax(energy_new, axis=-1)
    out = jnp.einsum("bqc,bcs->bqs", attn, xf,
                     precision=jax.lax.Precision.HIGHEST)
    return out.reshape(B, Q, H, W)


if __name__ == "__main__":
    key = jax.random.PRNGKey(0)
    k1, k2 = jax.random.split(key)

    B, base_c, H, W = 2, 4, 16, 16
    in_dim = base_c * 5       # x has "C*5" channels
    query_dim = base_c        # guide channels

    x = jax.random.normal(k1, (B, in_dim, H, W), dtype=jnp.float32)
    guide = jax.random.normal(k2, (B, query_dim, H, W), dtype=jnp.float32)

    fn = jax.jit(guided_cam_module)
    out = jax.block_until_ready(fn(x, guide))

    ref = _reference(x, guide)
    assert out.shape == (B, query_dim, H, W)
    err = float(jnp.max(jnp.abs(out - ref)))
    assert err < 2e-3, f"max abs err {err}"

    print("KERNEL_OK")
</pallas_src>

<mosaic_0001>
module attributes {stable_mosaic.version = 11 : i64} {
  func.func @_fused_kernel(%arg0: i32, %arg1: memref<1x20x256xf32, #tpu.memory_space<vmem>>, %arg2: memref<1x4x256xf32, #tpu.memory_space<vmem>>, %arg3: memref<1x4x256xf32, #tpu.memory_space<vmem>>) attributes {dimension_semantics = [#tpu.dimension_semantics<parallel>], iteration_bounds = array<i64: 2>, scalar_prefetch = 0 : i64, scratch_operands = 0 : i64, tpu.core_type = #tpu.core_type<tc>, window_params = [{transform_indices = @transform_0, window_bounds = array<i64: 1, 20, 256>}, {transform_indices = @transform_1, window_bounds = array<i64: 1, 4, 256>}, {transform_indices = @transform_2, window_bounds = array<i64: 1, 4, 256>}]} {
    %c0 = arith.constant 0 : index
    %c0_0 = arith.constant 0 : index
    %c0_1 = arith.constant 0 : index
    %0 = vector.load %arg1[%c0, %c0_0, %c0_1] : memref<1x20x256xf32, #tpu.memory_space<vmem>>, vector<1x20x256xf32>
    %1 = vector.shape_cast %0 : vector<1x20x256xf32> to vector<20x256xf32>
    %c0_2 = arith.constant 0 : index
    %c0_3 = arith.constant 0 : index
    %c0_4 = arith.constant 0 : index
    %2 = vector.load %arg2[%c0_2, %c0_3, %c0_4] : memref<1x4x256xf32, #tpu.memory_space<vmem>>, vector<1x4x256xf32>
    %3 = vector.shape_cast %2 : vector<1x4x256xf32> to vector<4x256xf32>
    %cst = arith.constant dense<0.000000e+00> : vector<4x20xf32>
    %4 = tpu.matmul %3, %1, %cst {dimension_numbers = #tpu.dot_dimension_numbers<[1], [1], [0], [0], [0, 0, 1, 0], [], []>} : vector<4x256xf32>, vector<20x256xf32>, vector<4x20xf32> -> vector<4x20xf32>
    %cst_5 = arith.constant dense<0x7F800000> : vector<4xf32>
    %5 = vector.multi_reduction <minimumf>, %4, %cst_5 [1] : vector<4x20xf32> to vector<4xf32>
    %6 = vector.shape_cast %5 : vector<4xf32> to vector<4x1xf32>
    %7 = vector.broadcast %6 : vector<4x1xf32> to vector<4x20xf32>
    %8 = arith.subf %7, %4 : vector<4x20xf32>
    %9 = math.exp %8 : vector<4x20xf32>
    %cst_6 = arith.constant dense<0.000000e+00> : vector<4xf32>
    %10 = vector.multi_reduction <add>, %9, %cst_6 [1] : vector<4x20xf32> to vector<4xf32>
    %11 = vector.shape_cast %10 : vector<4xf32> to vector<4x1xf32>
    %12 = vector.broadcast %11 : vector<4x1xf32> to vector<4x20xf32>
    %13 = arith.divf %9, %12 : vector<4x20xf32>
    %cst_7 = arith.constant dense<0.000000e+00> : vector<4x256xf32>
    %14 = tpu.matmul %13, %1, %cst_7 {dimension_numbers = #tpu.dot_dimension_numbers<[1], [0], [0], [1], [0, 0, 1, 1], [], []>} : vector<4x20xf32>, vector<20x256xf32>, vector<4x256xf32> -> vector<4x256xf32>
    %c0_8 = arith.constant 0 : index
    %c0_9 = arith.constant 0 : index
    %c0_10 = arith.constant 0 : index
    %15 = vector.load %arg3[%c0_8, %c0_9, %c0_10] : memref<1x4x256xf32, #tpu.memory_space<vmem>>, vector<1x4x256xf32>
    %16 = vector.shape_cast %15 : vector<1x4x256xf32> to vector<4x256xf32>
    %17 = vector.shape_cast %14 : vector<4x256xf32> to vector<1x4x256xf32>
    tpu.vector_store %arg3[%c0_8, %c0_9, %c0_10], %17 {strides = array<i32>} : memref<1x4x256xf32, #tpu.memory_space<vmem>>, vector<1x4x256xf32>,
    return
  }
  func.func @transform_0(%arg0: i32) -> (i32, i32, i32) {
    %c0_i32 = arith.constant 0 : i32
    %c0_i32_0 = arith.constant 0 : i32
    %c0_i32_1 = arith.constant 0 : i32
    return %arg0, %c0_i32, %c0_i32_0 : i32, i32, i32
  }
  func.func @transform_1(%arg0: i32) -> (i32, i32, i32) {
    %c0_i32 = arith.constant 0 : i32
    %c0_i32_0 = arith.constant 0 : i32
    %c0_i32_1 = arith.constant 0 : i32
    return %arg0, %c0_i32, %c0_i32_0 : i32, i32, i32
  }
  func.func @transform_2(%arg0: i32) -> (i32, i32, i32) {
    %c0_i32 = arith.constant 0 : i32
    %c0_i32_0 = arith.constant 0 : i32
    %c0_i32_1 = arith.constant 0 : i32
    return %arg0, %c0_i32, %c0_i32_0 : i32, i32, i32
  }
}

</mosaic_0001>

<bundles_post_ra>
// kernel: guided_cam_module.1
= control target key start
LH: loop header
LB: loop body
LE: loop exit
PB: predicated region body
PF: predicated region fallthrough
CT: control target
= control target key end

     0   :  { %s420_s9 = smov 0   ;;  %s451_s0 = inlined_call_operand.vmem [shape: f32[2,20,256], index: 0, kind: input, shape index: {}]   ;;  %s452_s1 = inlined_call_operand.vmem [shape: f32[2,4,256], index: 1, kind: input, shape index: {}]   ;;  %s453_s2 = inlined_call_operand.vmem [shape: f32[2,4,256], index: 2, kind: output, shape index: {}]  }
   0x1 LB: > { %s366_s10 = sadd.s32 4294967295, %s403_s9   ;;  %p370_p0 = scmp.ge.s32.totalorder %s403_s9, 1  ;;  %s403_s9 = sphi %s420_s9, %s12_s9  }
   0x2   : > { %p122_p1 = scmp.lt.s32.totalorder %s403_s9, 3 }
   0x4   : > { %p123_p2 = pnand %p370_p0, %p122_p1 }
   0x5   : > { %p149_p3 = scmp.lt.s32.totalorder (!%p123_p2), %s366_s10, 1 }
   0x6   : > { %126 = sbr.rel (%p123_p2) target bundleno = 555 (0x22b), region = 28 }
   0xb   : > { %s455_s10 = smov (!%p149_p3, %s366_s10), 1  ;;  %vm217_vm0 = vcmask 158720   ;;  %vm246_vm1 = vcmask 1043456   ;;  %vm242_vm6 = vcmask 162816  }
   0xc   : > { %s384_s11 = smul.u32 48, %s455_s10  ;;  %s382_s12 = sshll.u32 %s455_s10, 3 }
   0xd   : > { %s158_s15 = scalar_lea.vmem %s452_s1, %s382_s12  ;;  %s163_s21 = scalar_lea.vmem %s453_s2, %s382_s12 }
   0xe   : > { %s153_s18 = scalar_lea.vmem %s451_s0, %s384_s11  ;;  %v170_v0 = vld [vmem:[%s158_s15] sm:$0xff] }
   0xf   : > { %v168_v1 = vld [vmem:[%s153_s18 + $0x20] sm:$0xf]  ;;  %172 = vst [vmem:[#allocation1] ss:$2 sm:$0xff] %v170_v0  ;;  %v169_v2 = vld [vmem:[%s153_s18 + $0x28] sm:$0xf] }
  0x10   : > { %190 = vmatpush.xpose.msra.mxu0 %v168_v1  ;;  %210 = vmatpush.xpose.msra.mxu1 %v169_v2  ;;  %v166_v3 = vld [vmem:[%s153_s18 + $0x10] sm:$0xff]  ;;  %v167_v4 = vld [vmem:[%s153_s18 + $0x18] sm:$0xff]  ;;  %v164_v5 = vld [vmem:[%s153_s18] sm:$0xff] }
  0x11   : > { %v165_v6 = vld [vmem:[%s153_s18 + $0x8] sm:$0xff]  ;;  %376 = vmatpush.msk.msra.mxu2 %vm246_vm1, %v168_v1  ;;  %378 = vmatpush.msk.msra.mxu3 %vm246_vm1, %v169_v2 }
  0x13   : > { %267 = vmatpush.msra.mxu2 %v166_v3  ;;  %287 = vmatpush.msra.mxu3 %v167_v4 }
  0x14   : > { %191 = vmatpush.xpose.msra.mxu0 %v166_v3  ;;  %211 = vmatpush.xpose.msra.mxu1 %v167_v4 }
  0x15   : > { %268 = vmatpush.msra.mxu2 %v164_v5  ;;  %288 = vmatpush.msra.mxu3 %v165_v6 }
  0x16   : > { %v173_v7 = vld.sshfl [vmem:[#allocation1] sm:$0xff pattern:$0x75316420]  ;;  %v174_v8 = vld.sshfl [vmem:[#allocation1 + $0x8] sm:$0xff pattern:$0x75316420] }
  0x18   : > { %192 = vmatpush.xpose.msra.mxu0 %v164_v5  ;;  %212 = vmatpush.xpose.msra.mxu1 %v165_v6 }
  0x1b   : > { %193 = vmatmul.f32.vlgmr.msra.gmra.mxu0 %v173_v7  ;;  %213 = vmatmul.f32.vlgmr.msra.gmra.mxu1 %v174_v8 }
  0x98   : > { %v194_v9 = vpop.f32.mrf.mxu0  ;;  %v214_v10 = vpop.f32.mrf.mxu1 }
  0x99   : > { %v215_v11 = vadd.f32 %v214_v10, %v194_v9 }
  0x9b   : > { %v218_v12 = vsel %vm217_vm0, %v215_v11, inf }
  0x9c   : > { %219 = vmin.xlane.f32.xlu0 %v218_v12 }
 0x10f   : > { %v220_v13 = vpop.xlane.xlu0 %219 }
 0x110   : > { %v221_v14 = vsub.f32 %v220_v13, %v215_v11 }
 0x112   : > { %v222_v15 = vmul.f32 1.442695, %v221_v14 }
 0x114   : > { %393 = vpow2.f32 %v222_v15 }
 0x11a   : > { %v394_v16 = vpop.eup %393 }
 0x11b   : > { %v224_v17 = vsel %vm217_vm0, %v394_v16, 0.0 }
 0x11c   : > { %225 = vadd.xlane.f32.xlu0 %v224_v17 }
 0x18f   : > { %v226_v18 = vpop.xlane.xlu0 %225 }
 0x190   : > { %395 = vrcp.f32 %v226_v18  ;;  %v238_v22 = vand.u32 2147483648, %v226_v18  ;;  %v236_v24 = vand.u32 2147483647, %v226_v18  ;;  %vm232_vm3 = vweird.f32 %v226_v18 }
 0x192   : > { %v239_v26 = vor.u32 1.1754944e-38, %v238_v22  ;;  %vm237_vm5 = vcmp.eq.f32.partialorder %v236_v24, 8.507059e+37 }
 0x196   : > { %v396_v19 = vpop.eup %395 }
 0x197   : > { %v228_v20 = vmul.f32 %v396_v19, %v226_v18  ;;  %vm233_vm2 = vweird.f32 %v396_v19 }
 0x198   : > { %vm234_vm4 = vmor %vm232_vm3, %vm233_vm2 }
 0x199   : > { %v229_v21 = vsub.f32 1.0, %v228_v20 }
 0x19b   : > { %v230_v23 = vmul.f32 %v396_v19, %v229_v21 }
 0x19d   : > { %v231_v25 = vadd.f32 %v396_v19, %v230_v23 }
 0x19f   : > { %v235_v27 = vsel %vm234_vm4, %v396_v19, %v231_v25 }
 0x1a0   : > { %v240_v28 = vsel %vm237_vm5, %v239_v26, %v235_v27 }
 0x1a1   : > { %v241_v29 = vmul.f32 %v394_v16, %v240_v28 }
 0x1a3   : > { %377 = vmatmul.msk.f32.vlgmr.msra.gmra.mxu2 %vm242_vm6, %v241_v29  ;;  %379 = vmatmul.msk.f32.vlgmr.msra.gmra.mxu3 %vm242_vm6, %v241_v29 }
 0x226   : > { %v290_v30 = vpop.f32.mrf.mxu3  ;;  %v270_v32 = vpop.f32.mrf.mxu2 }
 0x227   : > { %v295_v31 = vrot.slane %v290_v30, 4 }
 0x229   : > { %v296_v33 = vsel %vm246_vm1, %v270_v32, %v295_v31 }
 0x22a   : > { %298 = vst [vmem:[%s163_s21] sm:$0xff] %v296_v33 }
 0x22b PF: > { %s12_s9 = sadd.s32 1, %s403_s9  }
 0x22c   : > { %p9_p4 = scmp.ge.s32.totalorder %s12_s9, 4  }
 0x22e   :  { %11 = sbr.rel (!%p9_p4) target bundleno = 1 (0x1), region = 61 }

</bundles_post_ra>
